<compile_context>
chip_gen: v5e
topology: v5e:2x2
jax: 0.10.0
libtpu: 0.0.40
codegen_flags: <defaults>
</compile_context>

<pallas_src>
import functools

import jax
import jax.numpy as jnp
from jax.experimental import pallas as pl
from jax.experimental.pallas import tpu as pltpu

SUBLANES = 8
LANES = 128
GROUP = SUBLANES * LANES            # 1024 elements per (8, 128) vreg-tile group
MAX_BLOCK_GROUPS = 1024             # 1024 groups * 1024 elem * 4 B = 4 MiB / input / buffer


def _num_tensorcores():
    """2 only on chips exposing 2 TensorCores per device (v7x, v4 megacore)."""
    try:
        kind = jax.devices()[0].device_kind.lower()
    except Exception:
        return 1
    return 2 if ("v7" in kind or "v4" in kind) else 1


def _dice_kernel(x_ref, y_ref, xy_out_ref, sum_out_ref, *,
                 block_groups, steps, num_blocks, num_groups, needs_mask):
    c = pl.program_id(0)    # TensorCore split          (parallel)
    i = pl.program_id(1)    # step within the split     (sequential reduction)

    # The output blocks are resident accumulators across the reduction axis
    # (their block index is constant in i): zero them on the first step.
    @pl.when(i == 0)
    def _():
        xy_out_ref[...] = jnp.zeros_like(xy_out_ref)
        sum_out_ref[...] = jnp.zeros_like(sum_out_ref)

    x = x_ref[...].astype(jnp.float32)     # (block_groups, 8, 128)
    y = y_ref[...].astype(jnp.float32)

    def accumulate(xv, yv):
        # (bg, 8, 128) -> (1, 8, 128): adds whole vregs along axis 0,
        # pure VALU, no cross-lane (XLU) work in the hot loop.
        xy_out_ref[...] += jnp.sum(xv * yv, axis=0, keepdims=True)
        sum_out_ref[...] += jnp.sum(xv + yv, axis=0, keepdims=True)

    if needs_mask:
        logical = c * steps + i          # unclamped logical block index
        is_edge = logical >= num_blocks - 1

        # Only the last real block (ragged leading dim) and any clamped
        # duplicate overhang blocks pay for the mask.
        @pl.when(is_edge)
        def _():
            base = logical * block_groups
            gid = base + jax.lax.broadcasted_iota(jnp.int32, x.shape, 0)
            valid = gid < num_groups
            # Select before multiplying so stale/garbage data in the clipped
            # region (possibly NaN bit patterns) never reaches the arithmetic.
            accumulate(jnp.where(valid, x, 0.0), jnp.where(valid, y, 0.0))

        @pl.when(logical < num_blocks - 1)
        def _():
            accumulate(x, y)
    else:
        accumulate(x, y)


def dice_loss(output, target, smooth=1e-05, *, max_block_groups=MAX_BLOCK_GROUPS):
    """Pallas TPU implementation of DiceLoss.forward."""
    assert output.shape == target.shape

    y_pd = jnp.ravel(output)
    y_gt = jnp.ravel(target)
    n = y_pd.shape[0]
    smooth = jnp.float32(smooth)

    num_groups = n // GROUP
    main = num_groups * GROUP
    rem = n - main

    # <=1023-element ragged tail: summed directly in the wrapper (reads only the
    # tail elements; no full-array pad/copy is introduced for ragged n).
    if rem:
        tail_pd = y_pd[main:].astype(jnp.float32)
        tail_gt = y_gt[main:].astype(jnp.float32)
        tail_inter = jnp.sum(tail_pd * tail_gt)
        tail_total = jnp.sum(tail_pd) + jnp.sum(tail_gt)
    else:
        tail_inter = jnp.float32(0.0)
        tail_total = jnp.float32(0.0)

    if num_groups == 0:
        # Entire input fits in the tail (< 1024 elements): nothing to stream.
        inter = tail_inter
        total = tail_total
    else:
        # Layout-preserving (groups, 8, 128) view of the aligned prefix; XLA
        # fuses this with the ravel relayout, so no extra HBM pass (the old
        # jnp.pad copy is gone).  Native dtype is kept; the kernel casts.
        x3 = y_pd[:main].reshape(num_groups, SUBLANES, LANES)
        y3 = y_gt[:main].reshape(num_groups, SUBLANES, LANES)

        block_groups = min(max_block_groups, num_groups)
        num_blocks = -(-num_groups // block_groups)

        # 2-way split only where a second TensorCore exists (v7x / v4).
        num_splits = _num_tensorcores() if num_blocks >= 2 else 1
        steps = -(-num_blocks // num_splits)
        needs_mask = (num_groups % block_groups != 0) or (num_splits * steps > num_blocks)

        def in_map(c, i):
            # Clamp so overhanging steps re-read the last real block; the
            # in-kernel mask zeroes their contribution.
            return (jnp.minimum(c * steps + i, num_blocks - 1), 0, 0)

        out_map = lambda c, i: (c, 0, 0)

        kernel = functools.partial(
            _dice_kernel,
            block_groups=block_groups,
            steps=steps,
            num_blocks=num_blocks,
            num_groups=num_groups,
            needs_mask=needs_mask,
        )

        # 2 inputs x 2 pipeline buffers + 16 MiB headroom for outputs/internal.
        in_block_bytes = block_groups * GROUP * (x3.dtype.itemsize + y3.dtype.itemsize)
        vmem_limit = min(100 * 1024 * 1024, 2 * in_block_bytes + (16 << 20))

        xy_parts, sum_parts = pl.pallas_call(
            kernel,
            out_shape=(
                jax.ShapeDtypeStruct((num_splits, SUBLANES, LANES), jnp.float32),
                jax.ShapeDtypeStruct((num_splits, SUBLANES, LANES), jnp.float32),
            ),
            grid=(num_splits, steps),
            in_specs=[
                pl.BlockSpec((block_groups, SUBLANES, LANES), in_map),
                pl.BlockSpec((block_groups, SUBLANES, LANES), in_map),
            ],
            out_specs=(
                pl.BlockSpec((1, SUBLANES, LANES), out_map),
                pl.BlockSpec((1, SUBLANES, LANES), out_map),
            ),
            compiler_params=pltpu.CompilerParams(
                dimension_semantics=("parallel", "arbitrary"),
                vmem_limit_bytes=int(vmem_limit),
            ),
        )(x3, y3)

        inter = jnp.sum(xy_parts) + tail_inter
        total = jnp.sum(sum_parts) + tail_total

    score = (2.0 * inter + smooth) / (total + smooth)
    return 1.0 - score


def _dice_loss_ref(output, target, smooth=1e-05):
    y_pd = jnp.ravel(output).astype(jnp.float32)
    y_gt = jnp.ravel(target).astype(jnp.float32)
    inter = jnp.sum(y_pd * y_gt)
    score = (2.0 * inter + smooth) / (jnp.sum(y_pd) + jnp.sum(y_gt) + smooth)
    return 1.0 - score


if __name__ == "__main__":
    key = jax.random.PRNGKey(0)
    k1, k2, k3, k4, k5, k6 = jax.random.split(key, 6)

    # 1) Small aligned NCHW case (n = 2048, a multiple of 1024): single block,
    #    fast unmasked path.
    output = jax.nn.sigmoid(jax.random.normal(k1, (2, 4, 16, 16), jnp.float32))
    target = (jax.random.uniform(k2, (2, 4, 16, 16)) > 0.5).astype(jnp.float32)
    loss = jax.block_until_ready(dice_loss(output, target))
    ref = _dice_loss_ref(output, target)
    assert jnp.allclose(loss, ref, rtol=1e-5, atol=1e-6), (loss, ref)

    # 2) Ragged case: n = 33750 -> 32 aligned groups streamed by the kernel
    #    plus a 982-element wrapper tail (no pad copy anywhere).
    output2 = jax.nn.sigmoid(jax.random.normal(k3, (2, 3, 75, 75), jnp.float32))
    target2 = (jax.random.uniform(k4, (2, 3, 75, 75)) > 0.5).astype(jnp.float32)
    loss2 = jax.block_until_ready(dice_loss(output2, target2))
    ref2 = _dice_loss_ref(output2, target2)
    assert jnp.allclose(loss2, ref2, rtol=1e-4, atol=1e-5), (loss2, ref2)

    # 3) Multi-step reduction + clipped (masked) last block + optional TC split,
    #    exercised cheaply with a small max_block_groups.
    output3 = jax.nn.sigmoid(jax.random.normal(k5, (2, 3, 60, 60), jnp.float32))
    target3 = (jax.random.uniform(k6, (2, 3, 60, 60)) > 0.5).astype(jnp.float32)
    loss3 = jax.block_until_ready(dice_loss(output3, target3, max_block_groups=8))
    ref3 = _dice_loss_ref(output3, target3)
    assert jnp.allclose(loss3, ref3, rtol=1e-4, atol=1e-5), (loss3, ref3)

    print("KERNEL_OK")
</pallas_src>

<mosaic_0001>
module attributes {stable_mosaic.version = 11 : i64} {
  func.func @_dice_kernel(%arg0: i32, %arg1: i32, %arg2: memref<2x8x128xf32, #tpu.memory_space<vmem>>, %arg3: memref<2x8x128xf32, #tpu.memory_space<vmem>>, %arg4: memref<1x8x128xf32, #tpu.memory_space<vmem>>, %arg5: memref<1x8x128xf32, #tpu.memory_space<vmem>>) attributes {dimension_semantics = [#tpu.dimension_semantics<parallel>, #tpu.dimension_semantics<arbitrary>], iteration_bounds = array<i64: 1, 1>, scalar_prefetch = 0 : i64, scratch_operands = 0 : i64, tpu.core_type = #tpu.core_type<tc>, window_params = [{transform_indices = @transform_0, window_bounds = array<i64: 2, 8, 128>}, {transform_indices = @transform_1, window_bounds = array<i64: 2, 8, 128>}, {transform_indices = @transform_2, window_bounds = array<i64: 1, 8, 128>}, {transform_indices = @transform_3, window_bounds = array<i64: 1, 8, 128>}]} {
    %c0_i32 = arith.constant 0 : i32
    %0 = arith.cmpi eq, %arg1, %c0_i32 : i32
    %1 = arith.extui %0 : i1 to i32
    %c0_i32_0 = arith.constant 0 : i32
    %2 = arith.cmpi ne, %1, %c0_i32_0 : i32
    scf.if %2 {
      %cst_19 = arith.constant 0.000000e+00 : f32
      %17 = vector.broadcast %cst_19 : f32 to vector<1x8x128xf32>
      %c0_20 = arith.constant 0 : index
      %c0_21 = arith.constant 0 : index
      %c0_22 = arith.constant 0 : index
      %18 = vector.load %arg4[%c0_20, %c0_21, %c0_22] : memref<1x8x128xf32, #tpu.memory_space<vmem>>, vector<1x8x128xf32>
      tpu.vector_store %arg4[%c0_20, %c0_21, %c0_22], %17 {strides = array<i32>} : memref<1x8x128xf32, #tpu.memory_space<vmem>>, vector<1x8x128xf32>,
      %cst_23 = arith.constant 0.000000e+00 : f32
      %19 = vector.broadcast %cst_23 : f32 to vector<1x8x128xf32>
      %c0_24 = arith.constant 0 : index
      %c0_25 = arith.constant 0 : index
      %c0_26 = arith.constant 0 : index
      %20 = vector.load %arg5[%c0_24, %c0_25, %c0_26] : memref<1x8x128xf32, #tpu.memory_space<vmem>>, vector<1x8x128xf32>
      tpu.vector_store %arg5[%c0_24, %c0_25, %c0_26], %19 {strides = array<i32>} : memref<1x8x128xf32, #tpu.memory_space<vmem>>, vector<1x8x128xf32>,
    } else {
    }
    %c0 = arith.constant 0 : index
    %c0_1 = arith.constant 0 : index
    %c0_2 = arith.constant 0 : index
    %3 = vector.load %arg2[%c0, %c0_1, %c0_2] : memref<2x8x128xf32, #tpu.memory_space<vmem>>, vector<2x8x128xf32>
    %c0_3 = arith.constant 0 : index
    %c0_4 = arith.constant 0 : index
    %c0_5 = arith.constant 0 : index
    %4 = vector.load %arg3[%c0_3, %c0_4, %c0_5] : memref<2x8x128xf32, #tpu.memory_space<vmem>>, vector<2x8x128xf32>
    %c0_6 = arith.constant 0 : index
    %c0_7 = arith.constant 0 : index
    %c0_8 = arith.constant 0 : index
    %5 = vector.load %arg4[%c0_6, %c0_7, %c0_8] : memref<1x8x128xf32, #tpu.memory_space<vmem>>, vector<1x8x128xf32>
    %6 = arith.mulf %3, %4 : vector<2x8x128xf32>
    %cst = arith.constant dense<0.000000e+00> : vector<8x128xf32>
    %7 = vector.multi_reduction <add>, %6, %cst [0] : vector<2x8x128xf32> to vector<8x128xf32>
    %8 = vector.shape_cast %7 : vector<8x128xf32> to vector<1x8x128xf32>
    %9 = arith.addf %5, %8 : vector<1x8x128xf32>
    %c0_9 = arith.constant 0 : index
    %c0_10 = arith.constant 0 : index
    %c0_11 = arith.constant 0 : index
    %10 = vector.load %arg4[%c0_9, %c0_10, %c0_11] : memref<1x8x128xf32, #tpu.memory_space<vmem>>, vector<1x8x128xf32>
    tpu.vector_store %arg4[%c0_9, %c0_10, %c0_11], %9 {strides = array<i32>} : memref<1x8x128xf32, #tpu.memory_space<vmem>>, vector<1x8x128xf32>,
    %c0_12 = arith.constant 0 : index
    %c0_13 = arith.constant 0 : index
    %c0_14 = arith.constant 0 : index
    %11 = vector.load %arg5[%c0_12, %c0_13, %c0_14] : memref<1x8x128xf32, #tpu.memory_space<vmem>>, vector<1x8x128xf32>
    %12 = arith.addf %3, %4 : vector<2x8x128xf32>
    %cst_15 = arith.constant dense<0.000000e+00> : vector<8x128xf32>
    %13 = vector.multi_reduction <add>, %12, %cst_15 [0] : vector<2x8x128xf32> to vector<8x128xf32>
    %14 = vector.shape_cast %13 : vector<8x128xf32> to vector<1x8x128xf32>
    %15 = arith.addf %11, %14 : vector<1x8x128xf32>
    %c0_16 = arith.constant 0 : index
    %c0_17 = arith.constant 0 : index
    %c0_18 = arith.constant 0 : index
    %16 = vector.load %arg5[%c0_16, %c0_17, %c0_18] : memref<1x8x128xf32, #tpu.memory_space<vmem>>, vector<1x8x128xf32>
    tpu.vector_store %arg5[%c0_16, %c0_17, %c0_18], %15 {strides = array<i32>} : memref<1x8x128xf32, #tpu.memory_space<vmem>>, vector<1x8x128xf32>,
    return
  }
  func.func @transform_0(%arg0: i32, %arg1: i32) -> (i32, i32, i32) {
    %c1_i32 = arith.constant 1 : i32
    %0 = arith.muli %arg0, %c1_i32 : i32
    %1 = arith.addi %0, %arg1 : i32
    %c0_i32 = arith.constant 0 : i32
    %2 = arith.minsi %1, %c0_i32 : i32
    %c0_i32_0 = arith.constant 0 : i32
    %c0_i32_1 = arith.constant 0 : i32
    %c0_i32_2 = arith.constant 0 : i32
    return %2, %c0_i32_0, %c0_i32_1 : i32, i32, i32
  }
  func.func @transform_1(%arg0: i32, %arg1: i32) -> (i32, i32, i32) {
    %c1_i32 = arith.constant 1 : i32
    %0 = arith.muli %arg0, %c1_i32 : i32
    %1 = arith.addi %0, %arg1 : i32
    %c0_i32 = arith.constant 0 : i32
    %2 = arith.minsi %1, %c0_i32 : i32
    %c0_i32_0 = arith.constant 0 : i32
    %c0_i32_1 = arith.constant 0 : i32
    %c0_i32_2 = arith.constant 0 : i32
    return %2, %c0_i32_0, %c0_i32_1 : i32, i32, i32
  }
  func.func @transform_2(%arg0: i32, %arg1: i32) -> (i32, i32, i32) {
    %c0_i32 = arith.constant 0 : i32
    %c0_i32_0 = arith.constant 0 : i32
    %c0_i32_1 = arith.constant 0 : i32
    return %arg0, %c0_i32, %c0_i32_0 : i32, i32, i32
  }
  func.func @transform_3(%arg0: i32, %arg1: i32) -> (i32, i32, i32) {
    %c0_i32 = arith.constant 0 : i32
    %c0_i32_0 = arith.constant 0 : i32
    %c0_i32_1 = arith.constant 0 : i32
    return %arg0, %c0_i32, %c0_i32_0 : i32, i32, i32
  }
}

</mosaic_0001>

<bundles_post_ra>
// kernel: tpu_custom_call.1
= control target key start
LH: loop header
LB: loop body
LE: loop exit
PB: predicated region body
PF: predicated region fallthrough
CT: control target
= control target key end

     0   :  { %9 = vsyncpa [#allocation3], 0  ;;  %s276_s0 = inlined_call_operand.hbm [shape: f32[2,8,128], index: 0, kind: input, shape index: {}]   ;;  %s277_s1 = inlined_call_operand.hbm [shape: f32[2,8,128], index: 1, kind: input, shape index: {}]   ;;  %s278_s2 = inlined_call_operand.hbm [shape: f32[1,8,128], index: 2, kind: output, shape index: {0}]   ;;  %s279_s3 = inlined_call_operand.hbm [shape: f32[1,8,128], index: 3, kind: output, shape index: {1}]  }
   0x1   :  { %10 = vsyncpa [#allocation6], 0 }
   0x2   :  { %11 = vsyncpa [#allocation4], 0 }
   0x3   :  { %12 = vsyncpa [#allocation9], 0  ;;  %s23_s14 = sshll.u32 %s276_s0, 4  ;;  %s238_s15 = smov [#allocation2]   ;;  %s24_s14 = int_to_ptr.hbm [resolvable:$true] %s23_s14 }
   0x4   :  { %s25_s16 = sshll.u32 %s238_s15, 4  ;;  %s42_s19 = sshll.u32 %s277_s1, 4  ;;  %s26_s16 = int_to_ptr.vmem [resolvable:$true] %s25_s16  ;;  %s43_s19 = int_to_ptr.hbm [resolvable:$true] %s42_s19 }
   0x5   :  { %s239_s20 = smov 128   ;;  %s240_s21 = smov 8  }
   0x6   :  { %31 = dma.hbm_to_vmem [thread:$0]  %s24_s14, 256, %s26_s16, [#allocation3], %s239_s20, %s239_s20, %s240_s21  }
   0x7   :  { %s241_s22 = smov [#allocation5]  }
   0x8   :  { %s44_s23 = sshll.u32 %s241_s22, 4  ;;  %s45_s23 = int_to_ptr.vmem [resolvable:$true] %s44_s23 }
   0x9   :  { %50 = dma.hbm_to_vmem [thread:$0]  %s43_s19, 256, %s45_s23, [#allocation6], %s239_s20, %s239_s20, %s240_s21  }
   0xa   :  { %230 = dma.done.wait [#allocation3], 256  }
   0xb   :  { %231 = vsyncadd [#allocation3], 4294967040 }
   0xc   :  { %232 = dma.done.wait [#allocation6], 256  }
   0xd   :  { %233 = vsyncadd [#allocation6], 4294967040  ;;  %v73_v0 = vld [vmem:[#allocation2] sm:$0xff]  ;;  %v74_v1 = vld [vmem:[#allocation2 + $0x8] sm:$0xff]  ;;  %s242_s0 = smov [#allocation7]   ;;  %s96_s26 = sshll.u32 %s278_s2, 4  ;;  %s97_s26 = int_to_ptr.hbm [resolvable:$true] %s96_s26 }
   0xe   :  { %v75_v2 = vld [vmem:[#allocation5] sm:$0xff]  ;;  %v76_v3 = vld [vmem:[#allocation5 + $0x8] sm:$0xff]  ;;  %s94_s1 = sshll.u32 %s242_s0, 4  ;;  %s243_s27 = smov [#allocation8]   ;;  %s95_s1 = int_to_ptr.vmem [resolvable:$true] %s94_s1 }
   0xf   :  { %v78_v4 = vmul.f32 %v75_v2, %v73_v0  ;;  %v84_v5 = vadd.f32 %v75_v2, %v73_v0  ;;  %v79_v6 = vmul.f32 %v76_v3, %v74_v1  ;;  %v85_v7 = vadd.f32 %v76_v3, %v74_v1  ;;  %s105_s28 = sshll.u32 %s243_s27, 4  ;;  %s107_s4 = sshll.u32 %s279_s3, 4  ;;  %s106_s28 = int_to_ptr.vmem [resolvable:$true] %s105_s28  ;;  %s108_s4 = int_to_ptr.hbm [resolvable:$true] %s107_s4 }
  0x11   :  { %v80_v8 = vadd.f32 %v79_v6, %v78_v4  ;;  %v86_v9 = vadd.f32 %v85_v7, %v84_v5 }
  0x13   :  { %82 = vst [vmem:[#allocation7] sm:$0xff] %v80_v8 }
  0x14   :  { %88 = vst [vmem:[#allocation8] sm:$0xff] %v86_v9  ;;  %99 = dma.vmem_to_hbm [thread:$0]  %s95_s1, 128, %s97_s26, [#allocation4]  }
  0x15   :  { %110 = dma.vmem_to_hbm [thread:$0]  %s106_s28, 128, %s108_s4, [#allocation9]  }
  0x16   :  { %234 = dma.done.wait [#allocation4], 128  }
  0x17   :  { %235 = vsyncadd [#allocation4], 4294967168 }
  0x18   :  { %236 = dma.done.wait [#allocation9], 128  }
  0x19   :  { %237 = vsyncadd [#allocation9], 4294967168 }
  0x1a   :  { %119 = vsyncpa [#allocation3], 1 }
  0x1b   :  { %120 = vsyncpa [#allocation6], 1 }
  0x1c   :  { %121 = vsyncpa [#allocation4], 1 }
  0x1d   :  { %122 = vsyncpa [#allocation9], 1 }

</bundles_post_ra>
